<compile_context>
chip_gen: v6e
topology: v6e:2x2x1
jax: 0.10.0
libtpu: 0.0.40
codegen_flags: <defaults>
</compile_context>

<pallas_src>
import jax
import jax.numpy as jnp
from jax.experimental import pallas as pl
from jax.experimental.pallas import tpu as pltpu


def _round_up(n: int, m: int) -> int:
    return -(-n // m) * m


def simplenet_kernel(x_ref, w_ref, b_ref, o_ref):
    # Linear: logits = x @ W + b  (MXU matmul, f32 accumulation).
    x = x_ref[...]                        # (TB, D_in)   streamed batch tile
    w = w_ref[...]                        # (D_in, D_out) VMEM-resident
    b = b_ref[...]                        # (1, D_out)    VMEM-resident
    logits = jnp.dot(x, w, preferred_element_type=jnp.float32) + b

    # Numerically stable log_softmax over the last (lane) axis.  Mosaic masks
    # the lane padding of the (TB, D_out) tile, so max/sum reduce over the
    # real D_out columns only.
    m = jnp.max(logits, axis=-1, keepdims=True)
    shifted = logits - m
    lse = jnp.log(jnp.sum(jnp.exp(shifted), axis=-1, keepdims=True))
    o_ref[...] = (shifted - lse).astype(o_ref.dtype)


def prepare_params(w, b):
    """One-time static-parameter prep (outside the per-call forward path).

    w: (D_in, D_out) — the transposed PyTorch weight, used as-is (no padding).
    b: (D_out,)      — reshaped to a (1, D_out) row for in-kernel broadcast.
    """
    return w, b.reshape(1, -1)


def simplenet_forward(x, w, b2d, *, batch_tile: int = 1024, min_grid_tiles: int = 2):
    """x: (B, D_in) f32, w: (D_in, D_out) f32, b2d: (1, D_out) f32 -> (B, D_out)."""
    B, D_in = x.shape
    D_in_w, D_out = w.shape
    assert D_in_w == D_in and b2d.shape == (1, D_out)

    SUBLANE = 8
    # Big batch tiles amortize the ~0.35 us per-grid-step pipeline overhead.
    # Per-step VMEM footprint here is TB*(D_in+D_out)*4 B (double-buffered),
    # i.e. ~100 KiB at TB=1024 — far under every chip's scoped VMEM default
    # (16 MiB v5e, 32 MiB v6e/v7x), so no vmem_limit_bytes is needed at these
    # feature sizes.  Cap the tile so the grid keeps >= min_grid_tiles steps,
    # letting the "parallel" batch axis shard across both TensorCores on v7x.
    tb_cap = max(SUBLANE, _round_up(pl.cdiv(B, min_grid_tiles), SUBLANE))
    TB = max(SUBLANE, min(batch_tile, tb_cap))
    B_pad = _round_up(B, TB)

    # Only the batch axis is padded (cheap, few rows); feature dims stay at
    # their logical sizes so no extra HBM bytes are streamed or written back.
    x_in = x if B_pad == B else jnp.zeros((B_pad, D_in), x.dtype).at[:B].set(x)

    grid = (B_pad // TB,)
    out = pl.pallas_call(
        simplenet_kernel,
        out_shape=jax.ShapeDtypeStruct((B_pad, D_out), jnp.float32),
        grid=grid,
        in_specs=[
            pl.BlockSpec((TB, D_in), lambda i: (i, 0)),     # stream x over B
            pl.BlockSpec((D_in, D_out), lambda i: (0, 0)),  # W resident (full array)
            pl.BlockSpec((1, D_out), lambda i: (0, 0)),     # b resident (full array)
        ],
        out_specs=pl.BlockSpec((TB, D_out), lambda i: (i, 0)),  # narrow writeback
        compiler_params=pltpu.CompilerParams(
            dimension_semantics=("parallel",),  # batch tiles across TCs on v7x
        ),
    )(x_in, w, b2d)

    # Strip batch padding only (no feature slice needed).
    return out if B_pad == B else out[:B]


if __name__ == "__main__":
    # Shapes consistent with the module: reference tensor is randn(100, 7);
    # pick a small output size of 5.
    batch, input_size, output_size = 100, 7, 5

    key = jax.random.PRNGKey(0)
    kx, kw, kb = jax.random.split(key, 3)

    x = jax.random.normal(kx, (batch, input_size), dtype=jnp.float32)

    # Param init mimicking nn.Linear default: U(-1/sqrt(fan_in), 1/sqrt(fan_in)).
    # PyTorch stores weight as (out, in); we keep the transposed (in, out) layout.
    bound = 1.0 / jnp.sqrt(jnp.float32(input_size))
    w = jax.random.uniform(kw, (input_size, output_size),
                           minval=-bound, maxval=bound, dtype=jnp.float32)
    b = jax.random.uniform(kb, (output_size,),
                           minval=-bound, maxval=bound, dtype=jnp.float32)

    # One-time parameter prep (static layer params), outside the hot path.
    w_prep, b_prep = prepare_params(w, b)

    out = simplenet_forward(x, w_prep, b_prep)
    jax.block_until_ready(out)

    # Sanity check against plain-JAX reference.
    ref = jax.nn.log_softmax(x @ w + b, axis=-1)
    assert out.shape == (batch, output_size), "bad output shape"
    assert jnp.allclose(out, ref, atol=1e-4), "mismatch vs reference"

    print("KERNEL_OK")
</pallas_src>

<mosaic_0001>
module attributes {stable_mosaic.version = 11 : i64} {
  func.func @simplenet_kernel(%arg0: i32, %arg1: memref<56x7xf32, #tpu.memory_space<vmem>>, %arg2: memref<7x5xf32, #tpu.memory_space<vmem>>, %arg3: memref<1x5xf32, #tpu.memory_space<vmem>>, %arg4: memref<56x5xf32, #tpu.memory_space<vmem>>) attributes {dimension_semantics = [#tpu.dimension_semantics<parallel>], iteration_bounds = array<i64: 2>, scalar_prefetch = 0 : i64, scratch_operands = 0 : i64, tpu.core_type = #tpu.core_type<tc>, window_params = [{transform_indices = @transform_0, window_bounds = array<i64: 56, 7>}, {pipeline_mode = #tpu.pipeline_mode<synchronous>, transform_indices = @transform_1, window_bounds = array<i64: 7, 5>}, {pipeline_mode = #tpu.pipeline_mode<synchronous>, transform_indices = @transform_2, window_bounds = array<i64: 1, 5>}, {transform_indices = @transform_3, window_bounds = array<i64: 56, 5>}]} {
    %c0 = arith.constant 0 : index
    %c0_0 = arith.constant 0 : index
    %0 = vector.load %arg1[%c0, %c0_0] : memref<56x7xf32, #tpu.memory_space<vmem>>, vector<56x7xf32>
    %c0_1 = arith.constant 0 : index
    %c0_2 = arith.constant 0 : index
    %1 = vector.load %arg2[%c0_1, %c0_2] : memref<7x5xf32, #tpu.memory_space<vmem>>, vector<7x5xf32>
    %c0_3 = arith.constant 0 : index
    %c0_4 = arith.constant 0 : index
    %2 = vector.load %arg3[%c0_3, %c0_4] : memref<1x5xf32, #tpu.memory_space<vmem>>, vector<1x5xf32>
    %cst = arith.constant dense<0.000000e+00> : vector<56x5xf32>
    %3 = tpu.matmul %0, %1, %cst {dimension_numbers = #tpu.dot_dimension_numbers<[1], [0], [0], [1], [0, 0, 1, 1], [], []>} : vector<56x7xf32>, vector<7x5xf32>, vector<56x5xf32> -> vector<56x5xf32>
    %4 = vector.broadcast %2 : vector<1x5xf32> to vector<56x5xf32>
    %5 = arith.addf %3, %4 : vector<56x5xf32>
    %cst_5 = arith.constant dense<0xFF800000> : vector<56xf32>
    %6 = vector.multi_reduction <maximumf>, %5, %cst_5 [1] : vector<56x5xf32> to vector<56xf32>
    %7 = vector.shape_cast %6 : vector<56xf32> to vector<56x1xf32>
    %8 = vector.broadcast %7 : vector<56x1xf32> to vector<56x5xf32>
    %9 = arith.subf %5, %8 : vector<56x5xf32>
    %10 = math.exp %9 : vector<56x5xf32>
    %cst_6 = arith.constant dense<0.000000e+00> : vector<56xf32>
    %11 = vector.multi_reduction <add>, %10, %cst_6 [1] : vector<56x5xf32> to vector<56xf32>
    %12 = vector.shape_cast %11 : vector<56xf32> to vector<56x1xf32>
    %13 = math.log %12 : vector<56x1xf32>
    %14 = vector.broadcast %13 : vector<56x1xf32> to vector<56x5xf32>
    %15 = arith.subf %9, %14 : vector<56x5xf32>
    %c0_7 = arith.constant 0 : index
    %c0_8 = arith.constant 0 : index
    %16 = vector.load %arg4[%c0_7, %c0_8] : memref<56x5xf32, #tpu.memory_space<vmem>>, vector<56x5xf32>
    tpu.vector_store %arg4[%c0_7, %c0_8], %15 {strides = array<i32>} : memref<56x5xf32, #tpu.memory_space<vmem>>, vector<56x5xf32>,
    return
  }
  func.func @transform_0(%arg0: i32) -> (i32, i32) {
    %c0_i32 = arith.constant 0 : i32
    %c0_i32_0 = arith.constant 0 : i32
    return %arg0, %c0_i32 : i32, i32
  }
  func.func @transform_1(%arg0: i32) -> (i32, i32) {
    %c0_i32 = arith.constant 0 : i32
    %c0_i32_0 = arith.constant 0 : i32
    %c0_i32_1 = arith.constant 0 : i32
    return %c0_i32, %c0_i32_0 : i32, i32
  }
  func.func @transform_2(%arg0: i32) -> (i32, i32) {
    %c0_i32 = arith.constant 0 : i32
    %c0_i32_0 = arith.constant 0 : i32
    %c0_i32_1 = arith.constant 0 : i32
    return %c0_i32, %c0_i32_0 : i32, i32
  }
  func.func @transform_3(%arg0: i32) -> (i32, i32) {
    %c0_i32 = arith.constant 0 : i32
    %c0_i32_0 = arith.constant 0 : i32
    return %arg0, %c0_i32 : i32, i32
  }
}

</mosaic_0001>

<bundles_post_ra>
// kernel: tpu_custom_call.1
= control target key start
LH: loop header
LB: loop body
LE: loop exit
PB: predicated region body
PF: predicated region fallthrough
CT: control target
= control target key end

     0   :  { %s582_s12 = smov 0   ;;  %s675_s0 = inlined_call_operand.vmem [shape: f32[112,7], index: 0, kind: input, shape index: {}]   ;;  %s676_s1 = inlined_call_operand.vmem [shape: f32[7,5], index: 1, kind: input, shape index: {}]   ;;  %s677_s2 = inlined_call_operand.vmem [shape: f32[1,5], index: 2, kind: input, shape index: {}]   ;;  %s678_s3 = inlined_call_operand.vmem [shape: f32[112,5], index: 3, kind: output, shape index: {}]  }
   0x1 LB: > { %s463_s13 = sadd.s32 4294967295, %s558_s12   ;;  %p467_p0 = scmp.ge.s32.totalorder %s558_s12, 1  ;;  %s558_s12 = sphi %s582_s12, %s13_s12  }
   0x2   : > { %p138_p1 = scmp.lt.s32.totalorder %s558_s12, 3 }
   0x4   : > { %p139_p2 = pnand %p467_p0, %p138_p1 }
   0x5   : > { %s162_s16 = smul.u32 (!%p139_p2), 7, %s463_s13 }
   0x6   : > { %142 = sbr.rel (%p139_p2) target bundleno = 542 (0x21e), region = 32 }
   0x7   : > { %p163_p3 = scmp.lt.s32.totalorder (!%p139_p2), %s162_s16, 13 }
   0xb   : > { %v181_v0 = vld [vmem:[%s676_s1] sm:$0x7f]  ;;  %vm211_vm0 = vcmask 1046528   ;;  %v560_v1 = vmov 0.0   ;;  %vm561_vm1 = vmmov 0   ;;  %s680_s16 = smov (!%p163_p3, %s162_s16), 13 }
   0xc   : > { %489 = vmatprep.subr.mxu0 %v560_v1  ;;  %491 = vmatprep.mubr.msk.f32.mxu0 %vm561_vm1, %v560_v1  ;;  %s468_s17 = sshll.u32 %s680_s16, 3  ;;  %vm189_vm2 = vcmask 56320   ;;  %v470_v9 = vld [vmem:[%s677_s2] ss:$0 sm:$0xff]  ;;  %vm315_vm3 = vcmask 39936  }
   0xd   : > { %490 = vmatpush3.msk.msra.mxu0 %vm211_vm0, %v181_v0  ;;  %512 = vmatprep.subr.mxu1 %v560_v1  ;;  %s166_s20 = scalar_lea.vmem %s675_s0, %s468_s17  ;;  %s172_s25 = scalar_lea.vmem %s678_s3, %s468_s17 }
   0xe   : > { %513 = vmatpush3.msk.msra.mxu1 %vm211_vm0, %v181_v0  ;;  %503 = vmatprep.mubr.msk.f32.mxu1 %vm561_vm1, %v560_v1  ;;  %v174_v2 = vld [vmem:[%s166_s20] sm:$0xff]  ;;  %v175_v4 = vld [vmem:[%s166_s20 + $0x8] sm:$0xff]  ;;  %v176_v6 = vld [vmem:[%s166_s20 + $0x10] sm:$0xff] }
   0xf   : > { %v178_v3 = vld [vmem:[%s166_s20 + $0x20] sm:$0xff]  ;;  %492 = vmatmul.mubr.msk.f32.vlgmr.msra.gmra.mxu0 %vm189_vm2, %v174_v2  ;;  %v179_v5 = vld [vmem:[%s166_s20 + $0x28] sm:$0xff]  ;;  %v180_v7 = vld [vmem:[%s166_s20 + $0x30] sm:$0xff] }
  0x10   : > { %504 = vmatmul.mubr.msk.f32.vlgmr.msra.gmra.mxu1 %vm189_vm2, %v178_v3  ;;  %494 = vmatprep.mubr.msk.f32.mxu0 %vm561_vm1, %v560_v1  ;;  %v177_v8 = vld [vmem:[%s166_s20 + $0x18] sm:$0xff] }
  0x11   : > { %506 = vmatprep.mubr.msk.f32.mxu1 %vm561_vm1, %v560_v1 }
  0x13   : > { %495 = vmatmul.mubr.msk.f32.gmra.mxu0 %vm189_vm2, %v175_v4 }
  0x14   : > { %507 = vmatmul.mubr.msk.f32.gmra.mxu1 %vm189_vm2, %v179_v5  ;;  %497 = vmatprep.mubr.msk.f32.mxu0 %vm561_vm1, %v560_v1 }
  0x15   : > { %509 = vmatprep.mubr.msk.f32.mxu1 %vm561_vm1, %v560_v1 }
  0x17   : > { %498 = vmatmul.mubr.msk.f32.gmra.mxu0 %vm189_vm2, %v176_v6 }
  0x18   : > { %510 = vmatmul.mubr.msk.f32.gmra.mxu1 %vm189_vm2, %v180_v7  ;;  %500 = vmatprep.mubr.msk.f32.mxu0 %vm561_vm1, %v560_v1 }
  0x1b   : > { %501 = vmatmul.mubr.msk.f32.gmra.mxu0 %vm189_vm2, %v177_v8 }
  0xcf   : > { %v281_v10 = vpop.f32.mrf.mxu0 }
  0xd0   : > { %v301_v11 = vpop.f32.mrf.mxu1  ;;  %v282_v12 = vadd.f32 %v470_v9, %v281_v10 }
  0xd1   : > { %v302_v13 = vadd.f32 %v470_v9, %v301_v11  ;;  %v493_v14 = vpop.f32.mrf.mxu0 }
  0xd2   : > { %v505_v15 = vpop.f32.mrf.mxu1  ;;  %v316_v16 = vsel %vm315_vm3, %v282_v12, -inf }
  0xd3   : > { %317 = vmax.xlane.f32.xlu0 %v316_v16  ;;  %v286_v17 = vpop.f32.mrf.mxu0  ;;  %v328_v19 = vsel %vm315_vm3, %v302_v13, -inf }
  0xd4   : > { %v306_v18 = vpop.f32.mrf.mxu1  ;;  %v287_v22 = vadd.f32 %v470_v9, %v286_v17 }
  0xd5   : > { %v496_v20 = vpop.f32.mrf.mxu0  ;;  %v307_v35 = vadd.f32 %v470_v9, %v306_v18 }
  0xd6   : > { %v508_v21 = vpop.f32.mrf.mxu1  ;;  %v319_v29 = vsel %vm315_vm3, %v287_v22, -inf }
  0xd7   : > { %329 = vmax.xlane.f32.xlu0 %v328_v19  ;;  %v291_v23 = vpop.f32.mrf.mxu0  ;;  %v331_v37 = vsel %vm315_vm3, %v307_v35, -inf }
  0xd8   : > { %v311_v24 = vpop.f32.mrf.mxu1  ;;  %v292_v25 = vadd.f32 %v470_v9, %v291_v23 }
  0xd9   : > { %v312_v26 = vadd.f32 %v470_v9, %v311_v24  ;;  %v499_v27 = vpop.f32.mrf.mxu0 }
  0xda   : > { %v511_v28 = vpop.f32.mrf.mxu1  ;;  %v322_v30 = vsel %vm315_vm3, %v292_v25, -inf }
  0xdb   : > { %320 = vmax.xlane.f32.xlu0 %v319_v29  ;;  %323 = vmax.xlane.f32.xlu1 %v322_v30  ;;  %v296_v31 = vpop.f32.mrf.mxu0  ;;  %v334_v33 = vsel %vm315_vm3, %v312_v26, -inf }
  0xdc   : > { %v297_v32 = vadd.f32 %v470_v9, %v296_v31 }
  0xdd   : > { %v502_v34 = vpop.f32.mrf.mxu0 }
  0xde   : > { %v325_v36 = vsel %vm315_vm3, %v297_v32, -inf }
  0xdf   : > { %335 = vmax.xlane.f32.xlu0 %v334_v33  ;;  %326 = vmax.xlane.f32.xlu1 %v325_v36 }
  0xe3   : > { %332 = vmax.xlane.f32.xlu1 %v331_v37 }
 0x15c   : > { %v318_v38 = vpop.xlane.xlu0 %317 }
 0x15d   : > { %v625_v39 = vsub.f32 %v282_v12, %v318_v38 }
 0x15f   : > { %v344_v40 = vmul.f32 1.442695, %v625_v39 }
 0x160   : > { %v330_v41 = vpop.xlane.xlu0 %329 }
 0x161   : > { %524 = vpow2.f32 %v344_v40  ;;  %v628_v42 = vsub.f32 %v302_v13, %v330_v41 }
 0x163   : > { %v352_v43 = vmul.f32 1.442695, %v628_v42 }
 0x164   : > { %v321_v44 = vpop.xlane.xlu0 %320  ;;  %v324_v45 = vpop.xlane.xlu1 %323 }
 0x165   : > { %526 = vpow2.f32 %v352_v43  ;;  %v631_v46 = vsub.f32 %v287_v22, %v321_v44  ;;  %v633_v47 = vsub.f32 %v292_v25, %v324_v45 }
 0x167   : > { %v346_v48 = vmul.f32 1.442695, %v631_v46  ;;  %v348_v49 = vmul.f32 1.442695, %v633_v47 }
 0x168   : > { %v336_v50 = vpop.xlane.xlu0 %335  ;;  %v327_v51 = vpop.xlane.xlu1 %326 }
 0x169   : > { %528 = vpow2.f32 %v346_v48  ;;  %v637_v52 = vsub.f32 %v312_v26, %v336_v50  ;;  %v639_v53 = vsub.f32 %v297_v32, %v327_v51 }
 0x16a   : > { %530 = vpow2.f32 %v348_v49 }
 0x16b   : > { %v356_v54 = vmul.f32 1.442695, %v637_v52  ;;  %v350_v55 = vmul.f32 1.442695, %v639_v53 }
 0x16c   : > { %v333_v56 = vpop.xlane.xlu1 %332 }
 0x16d   : > { %532 = vpow2.f32 %v356_v54  ;;  %v643_v57 = vsub.f32 %v307_v35, %v333_v56 }
 0x16e   : > { %v525_v58 = vpop.eup %524  ;;  %534 = vpow2.f32 %v350_v55 }
 0x16f   : > { %v354_v59 = vmul.f32 1.442695, %v643_v57  ;;  %v358_v60 = vsel %vm315_vm3, %v525_v58, 0.0 }
 0x170   : > { %359 = vadd.xlane.f32.xlu1 %v358_v60 }
 0x171   : > { %536 = vpow2.f32 %v354_v59 }
 0x172   : > { %v527_v61 = vpop.eup %526 }
 0x173   : > { %v370_v62 = vsel %vm315_vm3, %v527_v61, 0.0 }
 0x174   : > { %371 = vadd.xlane.f32.xlu1 %v370_v62 }
 0x176   : > { %v529_v63 = vpop.eup %528 }
 0x177   : > { %v531_v0 = vpop.eup %530  ;;  %v361_v1 = vsel %vm315_vm3, %v529_v63, 0.0 }
 0x178   : > { %362 = vadd.xlane.f32.xlu0 %v361_v1  ;;  %v364_v2 = vsel %vm315_vm3, %v531_v0, 0.0 }
 0x179   : > { %365 = vadd.xlane.f32.xlu1 %v364_v2 }
 0x17a   : > { %v533_v3 = vpop.eup %532 }
 0x17b   : > { %v535_v4 = vpop.eup %534  ;;  %v376_v5 = vsel %vm315_vm3, %v533_v3, 0.0 }
 0x17c   : > { %v367_v6 = vsel %vm315_vm3, %v535_v4, 0.0 }
 0x17d   : > { %377 = vadd.xlane.f32.xlu1 %v376_v5  ;;  %368 = vadd.xlane.f32.xlu0 %v367_v6 }
 0x17e   : > { %v537_v7 = vpop.eup %536 }
 0x17f   : > { %v373_v8 = vsel %vm315_vm3, %v537_v7, 0.0 }
 0x181   : > { %374 = vadd.xlane.f32.xlu0 %v373_v8 }
 0x1f9   : > { %v360_v9 = vpop.xlane.xlu1 %359 }
 0x1fa   : > { %538 = vlog2.f32 %v360_v9 }
 0x1fd   : > { %v372_v10 = vpop.xlane.xlu1 %371 }
 0x1fe   : > { %540 = vlog2.f32 %v372_v10 }
 0x201   : > { %v363_v11 = vpop.xlane.xlu0 %362 }
 0x202   : > { %542 = vlog2.f32 %v363_v11  ;;  %v366_v12 = vpop.xlane.xlu1 %365 }
 0x203   : > { %544 = vlog2.f32 %v366_v12 }
 0x206   : > { %v369_v13 = vpop.xlane.xlu0 %368  ;;  %v378_v14 = vpop.xlane.xlu1 %377 }
 0x207   : > { %v539_v15 = vpop.eup %538  ;;  %546 = vlog2.f32 %v369_v13 }
 0x208   : > { %v380_v16 = vmul.f32 0.6931472, %v539_v15  ;;  %548 = vlog2.f32 %v378_v14 }
 0x20a   : > { %v393_v17 = vsub.f32 %v625_v39, %v380_v16  ;;  %v375_v18 = vpop.xlane.xlu0 %374 }
 0x20b   : > { %v541_v19 = vpop.eup %540  ;;  %550 = vlog2.f32 %v375_v18 }
 0x20c   : > { %400 = vst.msk [vmem:[%s172_s25] sm:$0xff] %vm315_vm3, %v393_v17  ;;  %v388_v20 = vmul.f32 0.6931472, %v541_v19 }
 0x20e   : > { %v397_v21 = vsub.f32 %v628_v42, %v388_v20 }
 0x20f   : > { %v543_v22 = vpop.eup %542 }
 0x210   : > { %v545_v23 = vpop.eup %544  ;;  %404 = vst.msk [vmem:[%s172_s25 + $0x20] sm:$0xff] %vm315_vm3, %v397_v21  ;;  %v382_v24 = vmul.f32 0.6931472, %v543_v22 }
 0x211   : > { %v384_v25 = vmul.f32 0.6931472, %v545_v23 }
 0x212   : > { %v394_v26 = vsub.f32 %v631_v46, %v382_v24 }
 0x213   : > { %v395_v27 = vsub.f32 %v633_v47, %v384_v25 }
 0x214   : > { %v547_v28 = vpop.eup %546  ;;  %401 = vst.msk [vmem:[%s172_s25 + $0x8] sm:$0xff] %vm315_vm3, %v394_v26 }
 0x215   : > { %v549_v29 = vpop.eup %548  ;;  %402 = vst.msk [vmem:[%s172_s25 + $0x10] sm:$0xff] %vm315_vm3, %v395_v27  ;;  %v386_v30 = vmul.f32 0.6931472, %v547_v28 }
 0x216   : > { %v392_v31 = vmul.f32 0.6931472, %v549_v29 }
 0x217   : > { %v396_v32 = vsub.f32 %v639_v53, %v386_v30 }
 0x218   : > { %v551_v33 = vpop.eup %550  ;;  %v399_v34 = vsub.f32 %v637_v52, %v392_v31 }
 0x219   : > { %403 = vst.msk [vmem:[%s172_s25 + $0x18] sm:$0xff] %vm315_vm3, %v396_v32  ;;  %v390_v35 = vmul.f32 0.6931472, %v551_v33 }
 0x21a   : > { %406 = vst.msk [vmem:[%s172_s25 + $0x30] sm:$0xff] %vm315_vm3, %v399_v34 }
 0x21b   : > { %v398_v36 = vsub.f32 %v643_v57, %v390_v35 }
 0x21d   : > { %405 = vst.msk [vmem:[%s172_s25 + $0x28] sm:$0xff] %vm315_vm3, %v398_v36 }
 0x21e PF: > { %s13_s12 = sadd.s32 1, %s558_s12  }
 0x21f   : > { %p10_p4 = scmp.ge.s32.totalorder %s13_s12, 4  }
 0x221   :  { %12 = sbr.rel (!%p10_p4) target bundleno = 1 (0x1), region = 62 }

</bundles_post_ra>
